<compile_context>
chip_gen: v7x
topology: tpu7x:2x2x1
jax: 0.10.0
libtpu: 0.0.40
codegen_flags: <defaults>
</compile_context>

<pallas_src>
import functools
import math

import jax
import jax.numpy as jnp
import numpy as np
from jax.experimental import pallas as pl
from jax.experimental.pallas import tpu as pltpu


def token_embedding_kernel(x_ref, w_ref, o_ref, *, fused):
    # x_ref: (tB, L, C) bf16 block
    # w_ref: fused -> (3C, tD); unfused -> (3, C, tD)   (tap-major rows)
    # o_ref: (tB, L, tD) in the caller's dtype
    tB, L, C = x_ref.shape
    tD = o_ref.shape[-1]
    M = tB * L
    cdt = w_ref.dtype

    # Flatten the batch tile into the sublane axis: one M = tB*L row matmul and
    # a single lane-dense store per grid step.  (The wrapper only selects
    # tB > 1 when L % 8 == 0, so this reshape is layout-preserving.)
    xb = x_ref[...].reshape(M, C)
    xf = xb.astype(jnp.float32)   # 32-bit path for the sublane rolls / selects

    if tB == 1:
        x_m1 = pltpu.roll(xf, shift=1, axis=0)        # x[(l-1) % L]
        x_p1 = pltpu.roll(xf, shift=M - 1, axis=0)    # x[(l+1) % L]
    else:
        # A plain roll on the flattened (tB*L, C) view crosses batch boundaries
        # on the first/last row of each batch element; blend in a second roll
        # that supplies the within-batch wrap row instead.
        l_idx = jax.lax.broadcasted_iota(jnp.int32, (tB, L, C), 1).reshape(M, C)
        x_m1 = jnp.where(l_idx == 0,
                         pltpu.roll(xf, shift=M - L + 1, axis=0),
                         pltpu.roll(xf, shift=1, axis=0))
        x_p1 = jnp.where(l_idx == L - 1,
                         pltpu.roll(xf, shift=L - 1, axis=0),
                         pltpu.roll(xf, shift=M - 1, axis=0))

    if fused:
        # Lane-aligned (C % 128 == 0) concat -> single K = 3C MXU matmul.
        x_cat = jnp.concatenate(
            [x_m1.astype(cdt), xb, x_p1.astype(cdt)], axis=-1)   # (M, 3C)
        acc = jnp.dot(x_cat, w_ref[...], preferred_element_type=jnp.float32)
    else:
        # Small / unaligned C: three K = C matmuls accumulated in f32.
        # TODO(synk): fold into one K=3C dot once unaligned lane-concat lowering
        # is guaranteed on all targeted Mosaic versions (modest win; mem-bound).
        acc = jnp.dot(xb, w_ref[1], preferred_element_type=jnp.float32)
        acc = acc + jnp.dot(x_m1.astype(cdt), w_ref[0],
                            preferred_element_type=jnp.float32)
        acc = acc + jnp.dot(x_p1.astype(cdt), w_ref[2],
                            preferred_element_type=jnp.float32)

    o_ref[...] = acc.reshape(tB, L, tD).astype(o_ref.dtype)


def _vmem_budget_and_limit():
    """(tile-selection budget, vmem_limit_bytes) derived from the actual chip."""
    try:
        cap = int(pltpu.get_tpu_info().vmem_capacity_bytes)
    except Exception:
        cap = 0
    if cap <= 0:
        cap = 64 * 1024 * 1024            # conservative fallback = v7x per-core VMEM
    limit = (3 * cap) // 4                # ~48 MiB on v7x, ~96 MiB on v5e/v6e
    budget = (3 * limit) // 4             # headroom for compiler-internal scratch
    return budget, limit


def _vmem_estimate(tB, L, C, tD, in_bytes, out_bytes, fused):
    """Double-buffered BlockSpec copies + in-kernel temporaries, in bytes."""
    M = tB * L
    blocks = (2 * M * C * in_bytes            # x block (double-buffered)
              + 2 * M * tD * out_bytes        # out block (double-buffered)
              + 2 * 3 * C * tD * in_bytes)    # weight block (double-buffered)
    x_tmp = M * C * (in_bytes + 6 * 4)        # xb + f32 copies (xf, rolls, iota, selects)
    cat_tmp = M * 3 * C * in_bytes if fused else 2 * M * C * in_bytes
    acc_tmp = M * tD * (4 + out_bytes)        # f32 accumulator + store-side cast
    return blocks + x_tmp + cat_tmp + acc_tmp


def _pick_tiles(B, L, C, D, in_bytes, out_bytes, budget, fused, max_tb):
    """Largest (tB, tD) whose VMEM estimate fits; prefers a resident full-D weight."""
    if D > 128 and D % 128 == 0:
        d_cands = [D] + [t for t in range(D - 128, 127, -128) if D % t == 0]
    else:
        d_cands = [D]                          # full-dim lane block is always legal
    b_divs = [t for t in range(min(B, max_tb), 0, -1) if B % t == 0]
    for tD in d_cands:
        # Keep at least two parallel grid steps when possible (v7x has 2 TCs).
        cap = B if (D // tD) >= 2 or B < 2 else max(1, B // 2)
        for tB in b_divs:
            if tB > cap:
                continue
            if _vmem_estimate(tB, L, C, tD, in_bytes, out_bytes, fused) <= budget:
                return tB, tD
    # TODO(synk): tile L (with a 1-row circular halo) if a single (1, L, D)
    # block ever exceeds the VMEM budget.
    return 1, d_cands[-1]


def token_embedding(x, weight, *, compute_dtype=jnp.bfloat16, out_dtype=None):
    """x: (B, L, C).  weight: (D, C, 3) in PyTorch Conv1d layout.  -> (B, L, D).

    out_dtype: opt-in narrower output (e.g. jnp.bfloat16) nearly halves the
    dominant HBM write of this memory-bound op; defaults to x.dtype.
    """
    B, L, C = x.shape
    D = weight.shape[0]
    out_dtype = x.dtype if out_dtype is None else np.dtype(out_dtype)

    # bf16 inputs halve HBM read traffic; accumulation stays f32 in-kernel.
    x_in = x.astype(compute_dtype)
    w_taps = jnp.transpose(weight, (2, 1, 0)).astype(compute_dtype)   # (3, C, D)
    fused = (C % 128 == 0)            # lane-aligned concat -> single K=3C matmul
    # Row index = tap*C + c, matching the in-kernel [x_{l-1} | x_l | x_{l+1}] concat.
    w_arg = w_taps.reshape(3 * C, D) if fused else w_taps

    in_bytes = np.dtype(compute_dtype).itemsize
    out_bytes = np.dtype(out_dtype).itemsize

    budget, vmem_limit = _vmem_budget_and_limit()
    # tB > 1 requires L % 8 == 0 so the in-kernel (tB*L, C) flatten is
    # layout-preserving (f32 sublane tile = 8 rows).
    max_tb = B if L % 8 == 0 else 1
    tB, tD = _pick_tiles(B, L, C, D, in_bytes, out_bytes, budget, fused, max_tb)
    grid = (B // tB, D // tD)

    if fused:
        w_spec = pl.BlockSpec((3 * C, tD), lambda b, d: (0, d))
    else:
        w_spec = pl.BlockSpec((3, C, tD), lambda b, d: (0, 0, d))

    kernel = functools.partial(token_embedding_kernel, fused=fused)

    return pl.pallas_call(
        kernel,
        out_shape=jax.ShapeDtypeStruct((B, L, D), out_dtype),
        grid_spec=pltpu.PrefetchScalarGridSpec(
            num_scalar_prefetch=0,
            grid=grid,
            in_specs=[
                pl.BlockSpec((tB, L, C), lambda b, d: (b, 0, 0)),
                w_spec,
            ],
            out_specs=pl.BlockSpec((tB, L, tD), lambda b, d: (b, 0, d)),
        ),
        compiler_params=pltpu.CompilerParams(
            dimension_semantics=("parallel", "parallel"),
            vmem_limit_bytes=int(vmem_limit)),
    )(x_in, w_arg)


def reference(x, weight):
    """Pure-JAX reference of the PyTorch forward (circular Conv1d, no bias)."""
    x_ncl = jnp.transpose(x, (0, 2, 1))                        # (B, C, L)
    x_pad = jnp.concatenate(
        [x_ncl[:, :, -1:], x_ncl, x_ncl[:, :, :1]], axis=-1)   # circular pad = 1
    out = jax.lax.conv_general_dilated(
        x_pad, weight, window_strides=(1,), padding="VALID",
        dimension_numbers=("NCH", "OIH", "NCH"))                # (B, D, L)
    return jnp.transpose(out, (0, 2, 1))                        # (B, L, D)


if __name__ == "__main__":
    key = jax.random.PRNGKey(0)

    def make_inputs(k, B, L, C, D):
        kx, kw = jax.random.split(k)
        x = jax.random.normal(kx, (B, L, C), dtype=jnp.float32)
        # Deterministic stand-in for kaiming_normal_(mode='fan_in', 'leaky_relu').
        fan_in = C * 3
        gain = math.sqrt(2.0 / (1.0 + 0.01 ** 2))
        std = gain / math.sqrt(fan_in)
        weight = std * jax.random.normal(kw, (D, C, 3), dtype=jnp.float32)
        return x, weight

    configs = (
        (2, 16, 4, 256),     # unaligned C, tB = 1           (three-dot path)
        (8, 16, 4, 256),     # unaligned C, multi-batch tile (flattened M = tB*L)
        (8, 16, 128, 256),   # lane-aligned C, multi-batch tile (fused K=3C matmul)
    )
    keys = jax.random.split(key, len(configs))
    for cfg_key, (B, L, C, D) in zip(keys, configs):
        x, weight = make_inputs(cfg_key, B, L, C, D)

        out = jax.block_until_ready(token_embedding(x, weight))
        assert out.shape == (B, L, D)

        # The kernel computes with bf16 inputs (f32 accumulation); compare against
        # a reference fed the same bf16-quantized inputs so only accumulation
        # order differs (the bf16 input cast is the only deliberate numerics
        # tradeoff vs. the pure-f32 PyTorch module).
        x_q = x.astype(jnp.bfloat16).astype(jnp.float32)
        w_q = weight.astype(jnp.bfloat16).astype(jnp.float32)
        ref = jax.block_until_ready(reference(x_q, w_q))
        np.testing.assert_allclose(np.asarray(out), np.asarray(ref),
                                   rtol=2e-3, atol=2e-3)

    print("KERNEL_OK")
</pallas_src>

<mosaic_0001>
module attributes {stable_mosaic.version = 11 : i64} {
  func.func @token_embedding_kernel(%arg0: i32, %arg1: i32, %arg2: memref<1x16x4xbf16, #tpu.memory_space<vmem>>, %arg3: memref<3x4x256xbf16, #tpu.memory_space<vmem>>, %arg4: memref<1x16x256xf32, #tpu.memory_space<vmem>>) attributes {dimension_semantics = [#tpu.dimension_semantics<parallel>, #tpu.dimension_semantics<parallel>], iteration_bounds = array<i64: 2, 1>, scalar_prefetch = 0 : i64, scratch_operands = 0 : i64, tpu.core_type = #tpu.core_type<tc>, window_params = [{transform_indices = @transform_0, window_bounds = array<i64: 1, 16, 4>}, {transform_indices = @transform_1, window_bounds = array<i64: 3, 4, 256>}, {transform_indices = @transform_2, window_bounds = array<i64: 1, 16, 256>}]} {
    %c0 = arith.constant 0 : index
    %c0_0 = arith.constant 0 : index
    %c0_1 = arith.constant 0 : index
    %0 = vector.load %arg2[%c0, %c0_0, %c0_1] : memref<1x16x4xbf16, #tpu.memory_space<vmem>>, vector<1x16x4xbf16>
    %1 = vector.shape_cast %0 : vector<1x16x4xbf16> to vector<16x4xbf16>
    %2 = arith.extf %1 : vector<16x4xbf16> to vector<16x4xf32>
    %c1_i32 = arith.constant 1 : i32
    %3 = tpu.dynamic_rotate %2 by %c1_i32 dim 0 : vector<16x4xf32>, i32 -> vector<16x4xf32>
    %c15_i32 = arith.constant 15 : i32
    %4 = tpu.dynamic_rotate %2 by %c15_i32 dim 0 : vector<16x4xf32>, i32 -> vector<16x4xf32>
    %c1 = arith.constant 1 : index
    %c0_2 = arith.constant 0 : index
    %c0_3 = arith.constant 0 : index
    %5 = vector.load %arg3[%c1, %c0_2, %c0_3] : memref<3x4x256xbf16, #tpu.memory_space<vmem>>, vector<1x4x256xbf16>
    %6 = vector.shape_cast %5 : vector<1x4x256xbf16> to vector<4x256xbf16>
    %cst = arith.constant dense<0.000000e+00> : vector<16x256xf32>
    %7 = tpu.matmul %1, %6, %cst {dimension_numbers = #tpu.dot_dimension_numbers<[1], [0], [0], [1], [0, 0, 1, 1], [], []>} : vector<16x4xbf16>, vector<4x256xbf16>, vector<16x256xf32> -> vector<16x256xf32>
    %8 = arith.truncf %3 : vector<16x4xf32> to vector<16x4xbf16>
    %c0_4 = arith.constant 0 : index
    %c0_5 = arith.constant 0 : index
    %c0_6 = arith.constant 0 : index
    %9 = vector.load %arg3[%c0_4, %c0_5, %c0_6] : memref<3x4x256xbf16, #tpu.memory_space<vmem>>, vector<1x4x256xbf16>
    %10 = vector.shape_cast %9 : vector<1x4x256xbf16> to vector<4x256xbf16>
    %cst_7 = arith.constant dense<0.000000e+00> : vector<16x256xf32>
    %11 = tpu.matmul %8, %10, %cst_7 {dimension_numbers = #tpu.dot_dimension_numbers<[1], [0], [0], [1], [0, 0, 1, 1], [], []>} : vector<16x4xbf16>, vector<4x256xbf16>, vector<16x256xf32> -> vector<16x256xf32>
    %12 = arith.addf %7, %11 : vector<16x256xf32>
    %13 = arith.truncf %4 : vector<16x4xf32> to vector<16x4xbf16>
    %c2 = arith.constant 2 : index
    %c0_8 = arith.constant 0 : index
    %c0_9 = arith.constant 0 : index
    %14 = vector.load %arg3[%c2, %c0_8, %c0_9] : memref<3x4x256xbf16, #tpu.memory_space<vmem>>, vector<1x4x256xbf16>
    %15 = vector.shape_cast %14 : vector<1x4x256xbf16> to vector<4x256xbf16>
    %cst_10 = arith.constant dense<0.000000e+00> : vector<16x256xf32>
    %16 = tpu.matmul %13, %15, %cst_10 {dimension_numbers = #tpu.dot_dimension_numbers<[1], [0], [0], [1], [0, 0, 1, 1], [], []>} : vector<16x4xbf16>, vector<4x256xbf16>, vector<16x256xf32> -> vector<16x256xf32>
    %17 = arith.addf %12, %16 : vector<16x256xf32>
    %18 = vector.shape_cast %17 : vector<16x256xf32> to vector<1x16x256xf32>
    %c0_11 = arith.constant 0 : index
    %c0_12 = arith.constant 0 : index
    %c0_13 = arith.constant 0 : index
    %19 = vector.load %arg4[%c0_11, %c0_12, %c0_13] : memref<1x16x256xf32, #tpu.memory_space<vmem>>, vector<1x16x256xf32>
    tpu.vector_store %arg4[%c0_11, %c0_12, %c0_13], %18 {strides = array<i32>} : memref<1x16x256xf32, #tpu.memory_space<vmem>>, vector<1x16x256xf32>,
    return
  }
  func.func @transform_0(%arg0: i32, %arg1: i32) -> (i32, i32, i32) {
    %c0_i32 = arith.constant 0 : i32
    %c0_i32_0 = arith.constant 0 : i32
    %c0_i32_1 = arith.constant 0 : i32
    return %arg0, %c0_i32, %c0_i32_0 : i32, i32, i32
  }
  func.func @transform_1(%arg0: i32, %arg1: i32) -> (i32, i32, i32) {
    %c0_i32 = arith.constant 0 : i32
    %c0_i32_0 = arith.constant 0 : i32
    %c0_i32_1 = arith.constant 0 : i32
    return %c0_i32, %c0_i32_0, %arg1 : i32, i32, i32
  }
  func.func @transform_2(%arg0: i32, %arg1: i32) -> (i32, i32, i32) {
    %c0_i32 = arith.constant 0 : i32
    %c0_i32_0 = arith.constant 0 : i32
    return %arg0, %c0_i32, %arg1 : i32, i32, i32
  }
}

</mosaic_0001>

<bundles_post_ra>
// kernel: tpu_custom_call.1
= control target key start
LH: loop header
LB: loop body
LE: loop exit
PB: predicated region body
PF: predicated region fallthrough
CT: control target
= control target key end

     0   :  { %7 = vsyncpa [#allocation3], 0  ;;  %s833_s0 = inlined_call_operand.vmem [shape: bf16[2,16,4], index: 0, kind: input, shape index: {}]   ;;  %s834_s1 = inlined_call_operand.vmem [shape: bf16[3,4,256], index: 1, kind: input, shape index: {}]   ;;  %s835_s2 = inlined_call_operand.hbm [shape: f32[2,16,256], index: 2, kind: output, shape index: {}]  }
   0x1   :  { %9 = vsyncpa [#allocation3 + $0x1], 0  ;;  %s700_s9 = smov 0   ;;  %s702_s10 = smov 0  }
   0x2   :  { %s704_s11 = smov 0   ;;  %s706_s12 = smov 0  }
   0x3   :  { %s708_s13 = smov 0   ;;  %s710_s14 = smov 0  }
   0x4 LB: > { %s505_s15 = sadd.s32 4294967295, %s679_s14   ;;  %s506_s16 = sadd.s32 4294967294, %s679_s14   ;;  %s679_s14 = sphi %s710_s14, %s15_s14   ;;  %s675_s13 = sphi %s708_s13, %s842_s13   ;;  %s671_s12 = sphi %s706_s12, %s841_s12   ;;  %s667_s11 = sphi %s704_s11, %s840_s11   ;;  %s663_s10 = sphi %s702_s10, %s839_s10   ;;  %s659_s9 = sphi %s700_s9, %s838_s9  }
   0x5   : > { %s27_s17 = sadd.s32 1, %s675_s13  ;;  %s88_s18 = sadd.s32 1, %s667_s11 }
   0x6   : > { %p29_p0 = scmp.ge.s32.totalorder %s27_s17, 2  ;;  %p98_p1 = scmp.ne.s32.totalorder %s667_s11, %s663_s10 }
   0x7   : > { %p99_p2 = scmp.eq.s32.totalorder %s505_s15, 1  ;;  %p104_p3 = scmp.ne.s32.totalorder %s663_s10, %s659_s9 }
   0x8   : > { %s844_s17 = smov (%p29_p0, %s27_s17), 0  ;;  %p105_p5 = scmp.eq.s32.totalorder %s506_s16, 1 }
   0x9   : > { %p740_p4 = por %p99_p2, %p98_p1  ;;  %s83_s20 = ssub.s32 %s675_s13, %s844_s17 }
   0xa   : > { %p510_p6 = scmp.ge.s32.totalorder %s679_s14, 1  ;;  %p86_p7 = scmp.eq.s32.totalorder %s83_s20, 0 }
   0xb   : > { %p747_p8 = por %p105_p5, %p104_p3  ;;  %p140_p9 = scmp.lt.s32.totalorder %s679_s14, 3 }
   0xc   : > { %s753_s22 = scalar_select %p86_p7, %s667_s11, %s88_s18  }
   0xd   : > { %p141_p10 = pnand %p510_p6, %p140_p9 }
   0xe   : > { %v519_v0 = vld.sshfl [vmem:[%s834_s1 + $0x4] sm:$0x33 pattern:$0x76325410] (!%p141_p10)  ;;  %vm213_vm0 = vcmask (!%p141_p10), 1041408   ;;  %v681_v3 = vmov (!%p141_p10), 0   ;;  %v186_v5 = vlaneseq (!%p141_p10) }
   0xf   : > { %144 = sbr.rel (%p141_p10) target bundleno = 271 (0x10f), region = 28  ;;  %v276_v1 = vcombine.high (!%p141_p10), %v519_v0, %v519_v0  ;;  %v281_v2 = vsel (!%p141_p10), %vm213_vm0, %v519_v0, 0  ;;  %318 = vmatprep.mubr.bf16.mxu0 (!%p141_p10), %v681_v3  ;;  %v523_v4 = vld.sshfl [vmem:[%s834_s1 + $0x8] sm:$0x33 pattern:$0x76325410] (!%p141_p10)  ;;  %252 = vmatprep.mubr.bf16.mxu1 (!%p141_p10), %v681_v3 }
  0x10   : > { %p167_p11 = scmp.lt.s32.totalorder (!%p141_p10), %s671_s12, 1  ;;  %v340_v6 = vcombine.high (!%p141_p10), %v523_v4, %v523_v4  ;;  %v515_v7 = vld.sshfl [vmem:[%s834_s1] sm:$0x33 pattern:$0x76325410] (!%p141_p10)  ;;  %v187_v10 = vshrl.u32 (!%p141_p10), %v186_v5, 7 }
  0x11   : > { %520 = vmatprep.subr.msk.bf16.mxu0 (!%p141_p10), %vm213_vm0, %v276_v1  ;;  %v208_v8 = vcombine.high (!%p141_p10), %v515_v7, %v515_v7  ;;  %v215_v9 = vsel (!%p141_p10), %vm213_vm0, %v515_v7, 0  ;;  %vm209_vm1 = vcmask (!%p141_p10), 31744   ;;  %v345_v14 = vsel (!%p141_p10), %vm213_vm0, %v523_v4, 0  ;;  %s164_s6 = sand.u32 (!%p141_p10), 1, %s663_s10   ;;  %s532_s16 = sshll.u32 (!%p141_p10), %s671_s12, 9 }
  0x12   : > { %287 = vmatpush1.bf16.msra.mxu0 (!%p141_p10), %v281_v2  ;;  %vm188_vm2 = vcmp.lt.s32.totalorder (!%p141_p10), %v187_v10, 1  ;;  %vm193_vm3 = vcmp.lt.s32.totalorder (!%p141_p10), %v187_v10, 7  ;;  %s511_s7 = sshll.u32 (!%p141_p10), %s164_s6, 5  ;;  %s785_s23 = scalar_lea.hbm (!%p141_p10), %s835_s2, %s532_s16 }
  0x13   : > { %524 = vmatprep.subr.msk.bf16.mxu0 (!%p141_p10), %vm213_vm0, %v340_v6  ;;  %516 = vmatprep.subr.msk.bf16.mxu1 (!%p141_p10), %vm213_vm0, %v208_v8  ;;  %s166_s8 = scalar_lea.vmem (!%p141_p10), [#allocation2], %s511_s7  ;;  %s682_s25 = smov (!%p141_p10), [#allocation2]  }
  0x14   : > { %221 = vmatpush1.bf16.msra.mxu1 (!%p141_p10), %v215_v9  ;;  %s417_s15 = sshll.u32 (!%p141_p10), %s166_s8, 4  ;;  %s605_s26 = sshll.u32 (!%p141_p10), %s682_s25, 4  ;;  %s780_s15 = int_to_ptr.vmem [resolvable:$true] %s417_s15  ;;  %s606_s26 = int_to_ptr.vmem [resolvable:$false] %s605_s26 }
  0x15   : > { %s601_s24 = scalar_lea.vmem (!%p141_p10), %s780_s15, 512  ;;  %s607_s27 = scalar_lea.vmem (!%p141_p10), %s606_s26, 1024 }
  0x16   : > { %s168_s29 = scalar_select %p167_p11, %s671_s12, 1 }
  0x17   : > { %s787_s12 = scalar_lea.sflag [#allocation3], %s164_s6  ;;  %p602_p12 = scmp.ne.s32.totalorder %s780_s15, %s601_s24 }
  0x18   : > { %s531_s30 = sshll.u32 %s168_s29, 3  ;;  %p608_p1 = scmp.lt.s32.totalorder %s780_s15, %s606_s26 }
  0x19   : > { %s171_s5 = scalar_lea.vmem %s833_s0, %s531_s30  ;;  %p603_p13 = pnand %p602_p12, %p740_p4 }
  0x1a   : > { %v180_v11 = vld [vmem:[%s171_s5] sm:$0xff]   ;;  %p609_p2 = scmp.lt.s32.totalorder %s607_s27, %s601_s24 }
  0x1b   : > { %v182_v12 = vunpack.c.l.bf16 %v180_v11  ;;  %v183_v13 = vunpack.c.h.bf16 %v180_v11  ;;  %521 = vmatmul.mubr.msk.bf16.vlgmr.msra.gmra.mrb[0].mxu0 %vm209_vm1, %v180_v11  ;;  %p604_p0 = pneg %p603_p13 }
  0x1c   : > { %351 = vmatpush1.bf16.msra.mxu0 %v345_v14  ;;  %382 = vmatprep.mubr.bf16.mxu0 %v681_v3  ;;  %p610_p3 = por %p609_p2, %p608_p1 }
  0x1d   : > { %v184_v15 = vrot.slane %v182_v12, 7  ;;  %v185_v16 = vrot.slane %v183_v13, 7  ;;  %v191_v17 = vrot.slane %v182_v12, 1  ;;  %v192_v18 = vrot.slane %v183_v13, 1 }
  0x1e   : > { %p611_p5 = pnand %p610_p3, %p604_p0 }
  0x1f   : > { %v189_v19 = vsel %vm188_vm2, %v184_v15, %v185_v16  ;;  %v190_v20 = vsel %vm188_vm2, %v185_v16, %v184_v15  ;;  %v194_v22 = vsel %vm193_vm3, %v191_v17, %v192_v18  ;;  %v195_v23 = vsel %vm193_vm3, %v192_v18, %v191_v17 }
  0x20   : > { %v198_v21 = vpack.c.bf16 %v189_v19, %v190_v20  ;;  %v329_v24 = vpack.c.bf16 %v195_v23, %v194_v22 }
  0x22   : > { %517 = vmatmul.mubr.msk.bf16.vlgmr.msra.gmra.mrb[0].mxu1 %vm209_vm1, %v198_v21 }
  0x27   : > { %525 = vmatmul.mubr.msk.bf16.vlgmr.msra.gmra.mrb[0].mxu0 %vm209_vm1, %v329_v24 }
  0xf5   : > { %v254_v25 = vpop.f32.mrb[0].mxu1 }
  0xf6   : > { %v256_v26 = vpop.f32.mrb[1].mxu1 }
  0xf7   : > { %v258_v27 = vpop.f32.mrb[2].mxu1 }
  0xf8   : > { %v260_v28 = vpop.f32.mrb[3].mxu1 }
  0xfa   : > { %v384_v29 = vpop.f32.mrb[0].mxu0 }
  0xfb   : > { %v533_v30 = vadd.f32 %v384_v29, %v254_v25  ;;  %v386_v31 = vpop.f32.mrb[1].mxu0 }
  0xfc   : > { %v534_v32 = vadd.f32 %v386_v31, %v256_v26  ;;  %v388_v33 = vpop.f32.mrb[2].mxu0 }
  0xfd   : > { %397 = vst [vmem:[%s166_s8] sm:$0xff] %v533_v30  ;;  %v535_v34 = vadd.f32 %v388_v33, %v258_v27  ;;  %v390_v35 = vpop.f32.mrb[3].mxu0 }
  0xfe   : > { %398 = vst [vmem:[%s166_s8 + $0x8] sm:$0xff] %v534_v32  ;;  %v536_v36 = vadd.f32 %v390_v35, %v260_v28 }
  0xff   : > { %399 = vst [vmem:[%s166_s8 + $0x10] sm:$0xff] %v535_v34 }
 0x100   : > { %400 = vst [vmem:[%s166_s8 + $0x18] sm:$0xff] %v536_v36 }
 0x101   : > { %614 = shalt.err (!%p611_p5)
}
 0x102   : > { %s615_s28 = scalar_lea.hbm %s785_s23, 512  ;;  %s619_s3 = scalar_lea.hbm %s835_s2, 1024 }
 0x103   : > { %p616_p6 = scmp.ne.s32.totalorder %s785_s23, %s615_s28  ;;  %p620_p10 = scmp.lt.u32.totalorder %s785_s23, %s835_s2 }
 0x104   : > { %p621_p11 = scmp.lt.u32.totalorder %s619_s3, %s615_s28  ;;  %p623_p13 = scmp.lt.u32.totalorder %s615_s28, %s785_s23 }
 0x105   : > { %p617_p7 = pnand %p616_p6, %p740_p4 }
 0x106   : > { %p622_p12 = por %p621_p11, %p620_p10 }
 0x107   : > { %p618_p9 = pneg %p617_p7 }
 0x108   : > { %p624_p0 = por %p623_p13, %p622_p12 }
 0x10a   : > { %p625_p1 = pnand %p624_p0, %p618_p9 }
 0x10c   : > { %628 = shalt.err (!%p625_p1)
}
 0x10d   : > { %s683_s6 = smov 256   ;;  %s684_s7 = smov 16  }
 0x10e   : > { %541 = dma.vmem_to_hbm [thread:$0]  (%p740_p4), %s780_s15, 512, %s785_s23, %s787_s12, %s683_s6, %s683_s6, %s684_s7  }
 0x10f PF: > { %p547_p2 = scmp.ge.s32.totalorder %s679_s14, 2  ;;  %s432_s8 = sand.u32 1, %s659_s9  }
 0x110   : > { %s433_s16 = scalar_lea.sflag [#allocation3], %s432_s8 }
 0x111   : > { %p544_p3 = pnand %p547_p2, %p747_p8 }
 0x113   : > { %654 = dma.done.wait (!%p544_p3), %s433_s16, 512  }
 0x114   : > { %656 = vsyncadd (!%p544_p3), %s433_s16, 4294966784  ;;  %s15_s14 = sadd.s32 1, %s679_s14   ;;  %s838_s9 = smov %s663_s10 }
 0x115   : > { %p12_p5 = scmp.ge.s32.totalorder %s15_s14, 4   ;;  %s839_s10 = smov %s667_s11 }
 0x116   : > { %s840_s11 = smov %s753_s22  ;;  %s841_s12 = smov %s675_s13 }
 0x117   : > { %s842_s13 = smov %s844_s17  ;;  %14 = sbr.rel (!%p12_p5) target bundleno = 4 (0x4), region = 68 }
 0x11e   :  { %438 = vsyncpa [#allocation3], 1 }
 0x11f   :  { %440 = vsyncpa [#allocation3 + $0x1], 1 }

</bundles_post_ra>
